<compile_context>
chip_gen: v5e
topology: v5e:2x2
jax: 0.10.0
libtpu: 0.0.40
codegen_flags: <defaults>
</compile_context>

<pallas_src>
import functools
import math

import jax
import jax.numpy as jnp
from jax.experimental import pallas as pl
from jax.experimental.pallas import tpu as pltpu


# ----------------------------------------------------------------------------
# tiling helpers
# ----------------------------------------------------------------------------
def _round_up(a, b):
    return ((a + b - 1) // b) * b


def _sublane(dtype):
    # 8 rows for 4-byte dtypes, 16 for bf16/fp16, 32 for int8/fp8.
    return max(8, 32 // jnp.dtype(dtype).itemsize)


def _choose_row_tile(t, dtype, target=256):
    """Row (T) tile: full T for small T, otherwise `target` rounded to the sublane multiple."""
    if t <= target:
        return t, t                      # full-dim block is always a legal block shape
    tq = _round_up(target, _sublane(dtype))
    return tq, _round_up(t, tq)


def _choose_inter_tile(inter, target=512):
    """Inter (FFN hidden) tile: full for small inter, otherwise 512 (multiple of 128)."""
    if inter <= target:
        return inter, inter
    return target, _round_up(inter, target)


# ----------------------------------------------------------------------------
# Fused RMSNorm + multi-head causal attention + residual, grid over (batch, T tiles)
# ----------------------------------------------------------------------------
def _mha_kernel(x_full_ref, x_q_ref, wq_ref, wkv_ref, o_ref, k_s, v_s, *,
                heads, hs, tq, scale, eps):
    f32 = jnp.float32
    d = heads * hs
    ti = pl.program_id(1)

    @pl.when(ti == 0)
    def _():
        # Fused RMSNorm of the whole sequence (matches x.float() -> rsqrt -> type_as(x)),
        # then ONE lane-dense (T,D)@(D,2D) projection for K and V, stored head-major in
        # VMEM scratch and reused by every query tile of this batch element.
        xf = x_full_ref[0].astype(f32)
        inv = jax.lax.rsqrt(jnp.mean(xf * xf, axis=-1, keepdims=True) + eps)
        xn = (xf * inv).astype(x_full_ref.dtype)
        kv = jnp.dot(xn, wkv_ref[...], preferred_element_type=f32).astype(k_s.dtype)   # (T, 2D)
        k_s[...] = jnp.stack([kv[:, h * hs:(h + 1) * hs] for h in range(heads)], axis=0)
        v_s[...] = jnp.stack([kv[:, d + h * hs:d + (h + 1) * hs] for h in range(heads)], axis=0)

    # Fused RMSNorm of this query tile + Q projection (one (tq,D)@(D,D) matmul).
    xqf = x_q_ref[0].astype(f32)
    inv_q = jax.lax.rsqrt(jnp.mean(xqf * xqf, axis=-1, keepdims=True) + eps)
    xq = (xqf * inv_q).astype(x_q_ref.dtype)
    q = jnp.dot(xq, wq_ref[...], preferred_element_type=f32).astype(x_q_ref.dtype)     # (tq, D)
    qh = jnp.stack([q[:, h * hs:(h + 1) * hs] for h in range(heads)], axis=0)          # (H, tq, hs)

    kh = k_s[...]                                                                       # (H, T, hs)
    vh = v_s[...]
    t_full = kh.shape[1]

    # Batched score matmul (heads as batch dim) + additive causal bias softmax.
    s = jnp.einsum('hqc,hkc->hqk', qh, kh, preferred_element_type=f32) * scale          # (H, tq, T)
    q_off = ti * tq
    row = jax.lax.broadcasted_iota(jnp.int32, (tq, t_full), 0) + q_off
    col = jax.lax.broadcasted_iota(jnp.int32, (tq, t_full), 1)
    bias = jnp.where(col <= row, 0.0, -1e30).astype(f32)     # built once per tile, added (no per-head select)
    s = s + bias[None, :, :]
    m = jnp.max(s, axis=-1, keepdims=True)
    p = jnp.exp(s - m)
    p = p * pl.reciprocal(jnp.sum(p, axis=-1, keepdims=True), approx=True)
    attn = jnp.einsum('hqk,hkc->hqc', p.astype(vh.dtype), vh, preferred_element_type=f32)

    # Concatenate heads in torch `cat` order and add the residual (x_ori query tile).
    attn2 = jnp.concatenate([attn[h] for h in range(heads)], axis=-1)                    # (tq, D)
    o_ref[0] = (x_q_ref[0].astype(f32) + attn2).astype(o_ref.dtype)


def mha_causal_residual_block(x, wq, wkv, heads_num, *, eps):
    b, t, d = x.shape
    hs = d // heads_num
    scale = 1.0 / math.sqrt(hs)
    tq, t_pad = _choose_row_tile(t, x.dtype)
    n_t = t_pad // tq
    xp = x if t_pad == t else jnp.pad(x, ((0, 0), (0, t_pad - t), (0, 0)))

    itemsize = jnp.dtype(x.dtype).itemsize
    w_item = jnp.dtype(wq.dtype).itemsize
    est = (2 * t_pad * d * itemsize            # full-sequence input (double buffer)
           + 4 * tq * d * itemsize             # query tile + output (double buffers)
           + 2 * 3 * d * d * w_item            # Wq + [Wk|Wv] (double buffers)
           + 2 * t_pad * d * itemsize          # K/V scratch
           + 4 * (t_pad * 2 * d + 3 * heads_num * tq * t_pad + 3 * tq * d))  # f32 intermediates
    vmem_limit = int(min(48 << 20, max(16 << 20, 2 * est)))   # keep well below v7x's 64 MiB

    out = pl.pallas_call(
        functools.partial(_mha_kernel, heads=heads_num, hs=hs, tq=tq, scale=scale, eps=eps),
        out_shape=jax.ShapeDtypeStruct((b, t_pad, d), x.dtype),
        grid_spec=pltpu.PrefetchScalarGridSpec(
            num_scalar_prefetch=0,
            grid=(b, n_t),
            in_specs=[
                pl.BlockSpec((1, t_pad, d), lambda bi, ti: (bi, 0, 0)),   # full sequence (K/V + norm)
                pl.BlockSpec((1, tq, d), lambda bi, ti: (bi, ti, 0)),     # query tile / residual
                pl.BlockSpec((d, d), lambda bi, ti: (0, 0)),              # Wq       (resident)
                pl.BlockSpec((d, 2 * d), lambda bi, ti: (0, 0)),          # [Wk|Wv]  (resident)
            ],
            out_specs=pl.BlockSpec((1, tq, d), lambda bi, ti: (bi, ti, 0)),
            scratch_shapes=[pltpu.VMEM((heads_num, t_pad, hs), x.dtype),  # K
                            pltpu.VMEM((heads_num, t_pad, hs), x.dtype)], # V
        ),
        compiler_params=pltpu.CompilerParams(
            dimension_semantics=("parallel", "arbitrary"),
            vmem_limit_bytes=vmem_limit,
        ),
        cost_estimate=pl.CostEstimate(
            flops=int(2 * b * t_pad * d * 3 * d + 4 * b * heads_num * t_pad * t_pad * hs),
            transcendentals=int(b * heads_num * t_pad * t_pad + b * t_pad),
            bytes_accessed=int(3 * b * t_pad * d * itemsize + 3 * d * d * w_item),
        ),
    )(xp, xp, wq, wkv)

    return out if t_pad == t else out[:, :t, :]


# ----------------------------------------------------------------------------
# Fused RMSNorm + SwiGLU FFN + residual, grid over (batch, T tiles, inter chunks)
# ----------------------------------------------------------------------------
def _ffn_kernel(x_ref, w13_ref, b13_ref, w2_ref, b2_ref, o_ref, y_s, acc_s, *, tk, eps):
    f32 = jnp.float32
    ki = pl.program_id(2)

    @pl.when(ki == 0)
    def _():
        # Fused ffn_norm on the already-resident residual tile; init the f32 accumulator.
        xf = x_ref[0].astype(f32)
        inv = jax.lax.rsqrt(jnp.mean(xf * xf, axis=-1, keepdims=True) + eps)
        y_s[...] = (xf * inv).astype(y_s.dtype)
        acc_s[...] = jnp.zeros_like(acc_s)

    y = y_s[...]
    # One lane-dense matmul per inter chunk covering BOTH l1 and l3 columns: N = 2*tk.
    h = jnp.dot(y, w13_ref[0], preferred_element_type=f32) + b13_ref[0].astype(f32)     # (tq, 2*tk)
    h1 = h[:, :tk]
    h3 = h[:, tk:]
    g = (h1 * jax.nn.sigmoid(h1)) * h3                                                  # silu(l1) * l3
    acc_s[...] += jnp.dot(g.astype(y.dtype), w2_ref[...], preferred_element_type=f32)

    @pl.when(ki == pl.num_programs(2) - 1)
    def _():
        o_ref[0] = (x_ref[0].astype(f32) + acc_s[...] + b2_ref[...].astype(f32)).astype(o_ref.dtype)


def ffn_residual_block(x, w1, b1, w3, b3, w2, b2, *, eps):
    b, t, d = x.shape
    inter = w1.shape[1]
    tq, t_pad = _choose_row_tile(t, x.dtype)
    tk, inter_pad = _choose_inter_tile(inter)
    n_t, n_k = t_pad // tq, inter_pad // tk

    xp = x if t_pad == t else jnp.pad(x, ((0, 0), (0, t_pad - t), (0, 0)))
    if inter_pad != inter:
        pad_i = inter_pad - inter
        w1 = jnp.pad(w1, ((0, 0), (0, pad_i)))
        w3 = jnp.pad(w3, ((0, 0), (0, pad_i)))
        b1 = jnp.pad(b1, ((0, 0), (0, pad_i)))
        b3 = jnp.pad(b3, ((0, 0), (0, pad_i)))
        w2 = jnp.pad(w2, ((0, pad_i), (0, 0)))

    # Fuse l1/l3 per inter-chunk: weight layout (nK, D, 2*tk), bias layout (nK, 1, 2*tk).
    w13 = jnp.transpose(
        jnp.concatenate([w1.reshape(d, n_k, tk), w3.reshape(d, n_k, tk)], axis=2), (1, 0, 2))
    b13 = jnp.transpose(
        jnp.concatenate([b1.reshape(1, n_k, tk), b3.reshape(1, n_k, tk)], axis=2), (1, 0, 2))

    itemsize = jnp.dtype(x.dtype).itemsize
    w_item = jnp.dtype(w2.dtype).itemsize
    est = (4 * tq * d * itemsize
           + 2 * (d * 2 * tk + tk * d + 2 * tk + d) * w_item
           + tq * d * (itemsize + 4)
           + 4 * tq * 2 * tk * 3)
    vmem_limit = int(min(48 << 20, max(16 << 20, 2 * est)))

    out = pl.pallas_call(
        functools.partial(_ffn_kernel, tk=tk, eps=eps),
        out_shape=jax.ShapeDtypeStruct((b, t_pad, d), x.dtype),
        grid_spec=pltpu.PrefetchScalarGridSpec(
            num_scalar_prefetch=0,
            grid=(b, n_t, n_k),
            in_specs=[
                pl.BlockSpec((1, tq, d), lambda bi, ti, ki: (bi, ti, 0)),        # residual / norm input
                pl.BlockSpec((1, d, 2 * tk), lambda bi, ti, ki: (ki, 0, 0)),     # fused [w1|w3] chunk
                pl.BlockSpec((1, 1, 2 * tk), lambda bi, ti, ki: (ki, 0, 0)),     # fused [b1|b3] chunk
                pl.BlockSpec((tk, d), lambda bi, ti, ki: (ki, 0)),               # w2 row chunk
                pl.BlockSpec((1, d), lambda bi, ti, ki: (0, 0)),                 # b2 (resident)
            ],
            out_specs=pl.BlockSpec((1, tq, d), lambda bi, ti, ki: (bi, ti, 0)),
            scratch_shapes=[pltpu.VMEM((tq, d), x.dtype),       # normalized y (computed once per tile)
                            pltpu.VMEM((tq, d), jnp.float32)],  # f32 accumulator
        ),
        compiler_params=pltpu.CompilerParams(
            dimension_semantics=("parallel", "parallel", "arbitrary"),
            vmem_limit_bytes=vmem_limit,
        ),
        cost_estimate=pl.CostEstimate(
            flops=int(6 * b * t_pad * d * inter_pad),
            transcendentals=int(b * t_pad * inter_pad + b * t_pad),
            bytes_accessed=int(2 * b * t_pad * d * itemsize + (3 * d * inter_pad + d) * w_item),
        ),
    )(xp, w13, b13, w2, b2)

    return out if t_pad == t else out[:, :t, :]


# ----------------------------------------------------------------------------
# Full TransformerBlockPipe forward
# ----------------------------------------------------------------------------
def transformer_block_pipe(x_ori, params, *, heads_num, eps=1e-6):
    d_model = x_ori.shape[-1]
    assert d_model % heads_num == 0
    # Fused [Wk | Wv] weight; attention_norm / ffn_norm are computed inside the kernels
    # (their nn.Parameter `weight` is never used by the reference forward()).
    wkv = jnp.concatenate([params["wk"], params["wv"]], axis=1)
    out = mha_causal_residual_block(x_ori, params["wq"], wkv, heads_num, eps=eps)
    out = ffn_residual_block(out, params["w1"], params["b1"], params["w3"], params["b3"],
                             params["w2"], params["b2"], eps=eps)
    return out


# ----------------------------------------------------------------------------
# Pure-JAX reference (same math, high precision matmuls)
# ----------------------------------------------------------------------------
def _ref_forward(x, params, heads_num, eps=1e-6):
    hp = jax.lax.Precision.HIGHEST

    def rms(v):
        vf = v.astype(jnp.float32)
        return (vf * jax.lax.rsqrt(jnp.mean(vf * vf, axis=-1, keepdims=True) + eps)).astype(v.dtype)

    _, t, d = x.shape
    hs = d // heads_num
    xn = rms(x)
    q = jnp.matmul(xn, params["wq"], precision=hp)
    k = jnp.matmul(xn, params["wk"], precision=hp)
    v = jnp.matmul(xn, params["wv"], precision=hp)
    mask = jnp.tril(jnp.ones((t, t), dtype=bool))
    outs = []
    for h in range(heads_num):
        sl = slice(h * hs, (h + 1) * hs)
        s = jnp.matmul(q[..., sl], jnp.swapaxes(k[..., sl], -1, -2), precision=hp) / math.sqrt(hs)
        s = jnp.where(mask, s, -jnp.inf)
        w = jax.nn.softmax(s, axis=-1)
        outs.append(jnp.matmul(w, v[..., sl], precision=hp))
    o = x + jnp.concatenate(outs, axis=-1)
    y = rms(o)
    h1 = jnp.matmul(y, params["w1"], precision=hp) + params["b1"][0]
    h3 = jnp.matmul(y, params["w3"], precision=hp) + params["b3"][0]
    ff = jnp.matmul(jax.nn.silu(h1) * h3, params["w2"], precision=hp) + params["b2"][0]
    return o + ff


if __name__ == "__main__":
    key = jax.random.PRNGKey(0)
    batch, context_length, d_model, heads_num = 2, 8, 32, 4
    inter = 4 * d_model
    eps = 1e-6

    keys = jax.random.split(key, 10)
    x = jax.random.normal(keys[0], (batch, context_length, d_model), dtype=jnp.float32)

    s_in = 1.0 / math.sqrt(d_model)
    s_inter = 1.0 / math.sqrt(inter)
    params = {
        # concatenated per-head projections, stored as (in_features, out_features)
        "wq": jax.random.normal(keys[1], (d_model, d_model), jnp.float32) * s_in,
        "wk": jax.random.normal(keys[2], (d_model, d_model), jnp.float32) * s_in,
        "wv": jax.random.normal(keys[3], (d_model, d_model), jnp.float32) * s_in,
        "w1": jax.random.normal(keys[4], (d_model, inter), jnp.float32) * s_in,
        "b1": jax.random.normal(keys[5], (1, inter), jnp.float32) * s_in,
        "w3": jax.random.normal(keys[6], (d_model, inter), jnp.float32) * s_in,
        "b3": jax.random.normal(keys[7], (1, inter), jnp.float32) * s_in,
        "w2": jax.random.normal(keys[8], (inter, d_model), jnp.float32) * s_inter,
        "b2": jax.random.normal(keys[9], (1, d_model), jnp.float32) * s_inter,
    }

    out = transformer_block_pipe(x, params, heads_num=heads_num, eps=eps)
    out = jax.block_until_ready(out)

    ref = _ref_forward(x, params, heads_num=heads_num, eps=eps)
    assert out.shape == x.shape and out.dtype == x.dtype
    assert bool(jnp.all(jnp.isfinite(out)))
    err = float(jnp.max(jnp.abs(out.astype(jnp.float32) - ref.astype(jnp.float32))))
    assert err <= 5e-2, f"max abs err {err}"

    print("KERNEL_OK")
</pallas_src>

<mosaic_0001>
module attributes {stable_mosaic.version = 11 : i64} {
  func.func @_mha_kernel(%arg0: i32, %arg1: i32, %arg2: memref<1x8x32xf32, #tpu.memory_space<vmem>>, %arg3: memref<1x8x32xf32, #tpu.memory_space<vmem>>, %arg4: memref<32x32xf32, #tpu.memory_space<vmem>>, %arg5: memref<32x64xf32, #tpu.memory_space<vmem>>, %arg6: memref<1x8x32xf32, #tpu.memory_space<vmem>>, %arg7: memref<4x8x8xf32, #tpu.memory_space<vmem>>, %arg8: memref<4x8x8xf32, #tpu.memory_space<vmem>>) attributes {dimension_semantics = [#tpu.dimension_semantics<parallel>, #tpu.dimension_semantics<arbitrary>], iteration_bounds = array<i64: 2, 1>, scalar_prefetch = 0 : i64, scratch_operands = 2 : i64, tpu.core_type = #tpu.core_type<tc>, window_params = [{transform_indices = @transform_0, window_bounds = array<i64: 1, 8, 32>}, {transform_indices = @transform_1, window_bounds = array<i64: 1, 8, 32>}, {pipeline_mode = #tpu.pipeline_mode<synchronous>, transform_indices = @transform_2, window_bounds = array<i64: 32, 32>}, {pipeline_mode = #tpu.pipeline_mode<synchronous>, transform_indices = @transform_3, window_bounds = array<i64: 32, 64>}, {transform_indices = @transform_4, window_bounds = array<i64: 1, 8, 32>}]} {
    %c0_i32 = arith.constant 0 : i32
    %0 = arith.cmpi eq, %arg1, %c0_i32 : i32
    %1 = arith.extui %0 : i1 to i32
    %c0_i32_0 = arith.constant 0 : i32
    %2 = arith.cmpi ne, %1, %c0_i32_0 : i32
    scf.if %2 {
      %c0_27 = arith.constant 0 : index
      %c0_28 = arith.constant 0 : index
      %c0_29 = arith.constant 0 : index
      %69 = vector.load %arg2[%c0_27, %c0_28, %c0_29] : memref<1x8x32xf32, #tpu.memory_space<vmem>>, vector<1x8x32xf32>
      %70 = vector.shape_cast %69 : vector<1x8x32xf32> to vector<8x32xf32>
      %71 = arith.mulf %70, %70 : vector<8x32xf32>
      %cst_30 = arith.constant dense<0.000000e+00> : vector<8xf32>
      %72 = vector.multi_reduction <add>, %71, %cst_30 [1] : vector<8x32xf32> to vector<8xf32>
      %73 = vector.shape_cast %72 : vector<8xf32> to vector<8x1xf32>
      %cst_31 = arith.constant 3.200000e+01 : f32
      %74 = vector.broadcast %cst_31 : f32 to vector<8x1xf32>
      %75 = arith.divf %73, %74 : vector<8x1xf32>
      %cst_32 = arith.constant 9.99999997E-7 : f32
      %76 = vector.broadcast %cst_32 : f32 to vector<8x1xf32>
      %77 = arith.addf %75, %76 : vector<8x1xf32>
      %78 = math.rsqrt %77 : vector<8x1xf32>
      %79 = vector.broadcast %78 : vector<8x1xf32> to vector<8x32xf32>
      %80 = arith.mulf %70, %79 : vector<8x32xf32>
      %c0_33 = arith.constant 0 : index
      %c0_34 = arith.constant 0 : index
      %81 = vector.load %arg5[%c0_33, %c0_34] : memref<32x64xf32, #tpu.memory_space<vmem>>, vector<32x64xf32>
      %cst_35 = arith.constant dense<0.000000e+00> : vector<8x64xf32>
      %82 = tpu.matmul %80, %81, %cst_35 {dimension_numbers = #tpu.dot_dimension_numbers<[1], [0], [0], [1], [0, 0, 1, 1], [], []>} : vector<8x32xf32>, vector<32x64xf32>, vector<8x64xf32> -> vector<8x64xf32>
      %83 = vector.extract_strided_slice %82 {offsets = [0, 0], sizes = [8, 8], strides = [1, 1]} : vector<8x64xf32> to vector<8x8xf32>
      %84 = vector.extract_strided_slice %82 {offsets = [0, 8], sizes = [8, 8], strides = [1, 1]} : vector<8x64xf32> to vector<8x8xf32>
      %85 = vector.extract_strided_slice %82 {offsets = [0, 16], sizes = [8, 8], strides = [1, 1]} : vector<8x64xf32> to vector<8x8xf32>
      %86 = vector.extract_strided_slice %82 {offsets = [0, 24], sizes = [8, 8], strides = [1, 1]} : vector<8x64xf32> to vector<8x8xf32>
      %87 = vector.shape_cast %83 : vector<8x8xf32> to vector<1x8x8xf32>
      %88 = vector.shape_cast %84 : vector<8x8xf32> to vector<1x8x8xf32>
      %89 = vector.shape_cast %85 : vector<8x8xf32> to vector<1x8x8xf32>
      %90 = vector.shape_cast %86 : vector<8x8xf32> to vector<1x8x8xf32>
      %91 = tpu.concatenate %87, %88, %89, %90 in 0 : vector<1x8x8xf32>, vector<1x8x8xf32>, vector<1x8x8xf32>, vector<1x8x8xf32> -> vector<4x8x8xf32>
      %c0_36 = arith.constant 0 : index
      %c0_37 = arith.constant 0 : index
      %c0_38 = arith.constant 0 : index
      %92 = vector.load %arg7[%c0_36, %c0_37, %c0_38] : memref<4x8x8xf32, #tpu.memory_space<vmem>>, vector<4x8x8xf32>
      tpu.vector_store %arg7[%c0_36, %c0_37, %c0_38], %91 {strides = array<i32>} : memref<4x8x8xf32, #tpu.memory_space<vmem>>, vector<4x8x8xf32>,
      %93 = vector.extract_strided_slice %82 {offsets = [0, 32], sizes = [8, 8], strides = [1, 1]} : vector<8x64xf32> to vector<8x8xf32>
      %94 = vector.extract_strided_slice %82 {offsets = [0, 40], sizes = [8, 8], strides = [1, 1]} : vector<8x64xf32> to vector<8x8xf32>
      %95 = vector.extract_strided_slice %82 {offsets = [0, 48], sizes = [8, 8], strides = [1, 1]} : vector<8x64xf32> to vector<8x8xf32>
      %96 = vector.extract_strided_slice %82 {offsets = [0, 56], sizes = [8, 8], strides = [1, 1]} : vector<8x64xf32> to vector<8x8xf32>
      %97 = vector.shape_cast %93 : vector<8x8xf32> to vector<1x8x8xf32>
      %98 = vector.shape_cast %94 : vector<8x8xf32> to vector<1x8x8xf32>
      %99 = vector.shape_cast %95 : vector<8x8xf32> to vector<1x8x8xf32>
      %100 = vector.shape_cast %96 : vector<8x8xf32> to vector<1x8x8xf32>
      %101 = tpu.concatenate %97, %98, %99, %100 in 0 : vector<1x8x8xf32>, vector<1x8x8xf32>, vector<1x8x8xf32>, vector<1x8x8xf32> -> vector<4x8x8xf32>
      %c0_39 = arith.constant 0 : index
      %c0_40 = arith.constant 0 : index
      %c0_41 = arith.constant 0 : index
      %102 = vector.load %arg8[%c0_39, %c0_40, %c0_41] : memref<4x8x8xf32, #tpu.memory_space<vmem>>, vector<4x8x8xf32>
      tpu.vector_store %arg8[%c0_39, %c0_40, %c0_41], %101 {strides = array<i32>} : memref<4x8x8xf32, #tpu.memory_space<vmem>>, vector<4x8x8xf32>,
    } else {
    }
    %c0 = arith.constant 0 : index
    %c0_1 = arith.constant 0 : index
    %c0_2 = arith.constant 0 : index
    %3 = vector.load %arg3[%c0, %c0_1, %c0_2] : memref<1x8x32xf32, #tpu.memory_space<vmem>>, vector<1x8x32xf32>
    %4 = vector.shape_cast %3 : vector<1x8x32xf32> to vector<8x32xf32>
    %5 = arith.mulf %4, %4 : vector<8x32xf32>
    %cst = arith.constant dense<0.000000e+00> : vector<8xf32>
    %6 = vector.multi_reduction <add>, %5, %cst [1] : vector<8x32xf32> to vector<8xf32>
    %7 = vector.shape_cast %6 : vector<8xf32> to vector<8x1xf32>
    %cst_3 = arith.constant 3.200000e+01 : f32
    %8 = vector.broadcast %cst_3 : f32 to vector<8x1xf32>
    %9 = arith.divf %7, %8 : vector<8x1xf32>
    %cst_4 = arith.constant 9.99999997E-7 : f32
    %10 = vector.broadcast %cst_4 : f32 to vector<8x1xf32>
    %11 = arith.addf %9, %10 : vector<8x1xf32>
    %12 = math.rsqrt %11 : vector<8x1xf32>
    %13 = vector.broadcast %12 : vector<8x1xf32> to vector<8x32xf32>
    %14 = arith.mulf %4, %13 : vector<8x32xf32>
    %c0_5 = arith.constant 0 : index
    %c0_6 = arith.constant 0 : index
    %15 = vector.load %arg4[%c0_5, %c0_6] : memref<32x32xf32, #tpu.memory_space<vmem>>, vector<32x32xf32>
    %cst_7 = arith.constant dense<0.000000e+00> : vector<8x32xf32>
    %16 = tpu.matmul %14, %15, %cst_7 {dimension_numbers = #tpu.dot_dimension_numbers<[1], [0], [0], [1], [0, 0, 1, 1], [], []>} : vector<8x32xf32>, vector<32x32xf32>, vector<8x32xf32> -> vector<8x32xf32>
    %17 = vector.extract_strided_slice %16 {offsets = [0, 0], sizes = [8, 8], strides = [1, 1]} : vector<8x32xf32> to vector<8x8xf32>
    %18 = vector.extract_strided_slice %16 {offsets = [0, 8], sizes = [8, 8], strides = [1, 1]} : vector<8x32xf32> to vector<8x8xf32>
    %19 = vector.extract_strided_slice %16 {offsets = [0, 16], sizes = [8, 8], strides = [1, 1]} : vector<8x32xf32> to vector<8x8xf32>
    %20 = vector.extract_strided_slice %16 {offsets = [0, 24], sizes = [8, 8], strides = [1, 1]} : vector<8x32xf32> to vector<8x8xf32>
    %21 = vector.shape_cast %17 : vector<8x8xf32> to vector<1x8x8xf32>
    %22 = vector.shape_cast %18 : vector<8x8xf32> to vector<1x8x8xf32>
    %23 = vector.shape_cast %19 : vector<8x8xf32> to vector<1x8x8xf32>
    %24 = vector.shape_cast %20 : vector<8x8xf32> to vector<1x8x8xf32>
    %25 = tpu.concatenate %21, %22, %23, %24 in 0 : vector<1x8x8xf32>, vector<1x8x8xf32>, vector<1x8x8xf32>, vector<1x8x8xf32> -> vector<4x8x8xf32>
    %c0_8 = arith.constant 0 : index
    %c0_9 = arith.constant 0 : index
    %c0_10 = arith.constant 0 : index
    %26 = vector.load %arg7[%c0_8, %c0_9, %c0_10] : memref<4x8x8xf32, #tpu.memory_space<vmem>>, vector<4x8x8xf32>
    %c0_11 = arith.constant 0 : index
    %c0_12 = arith.constant 0 : index
    %c0_13 = arith.constant 0 : index
    %27 = vector.load %arg8[%c0_11, %c0_12, %c0_13] : memref<4x8x8xf32, #tpu.memory_space<vmem>>, vector<4x8x8xf32>
    "tpu.trace_start"() <{level = 10 : i32, message = "hqc,hkc->hqk"}> : () -> ()
    %cst_14 = arith.constant dense<0.000000e+00> : vector<4x8x8xf32>
    %28 = tpu.matmul %25, %26, %cst_14 {dimension_numbers = #tpu.dot_dimension_numbers<[2], [2], [1], [1], [0, 0, 0, 1, 1, 1], [0], [0]>} : vector<4x8x8xf32>, vector<4x8x8xf32>, vector<4x8x8xf32> -> vector<4x8x8xf32>
    "tpu.trace_stop"() : () -> ()
    %cst_15 = arith.constant 0.353553385 : f32
    %29 = vector.broadcast %cst_15 : f32 to vector<4x8x8xf32>
    %30 = arith.mulf %28, %29 : vector<4x8x8xf32>
    %c8_i32 = arith.constant 8 : i32
    %31 = arith.muli %arg1, %c8_i32 : i32
    %32 = tpu.iota {dimensions = array<i32: 0>} : vector<8x8xi32>
    %33 = vector.broadcast %31 : i32 to vector<8x8xi32>
    %34 = arith.addi %32, %33 : vector<8x8xi32>
    %35 = tpu.iota {dimensions = array<i32: 1>} : vector<8x8xi32>
    %36 = arith.cmpi sle, %35, %34 : vector<8x8xi32>
    %cst_16 = arith.constant 0.000000e+00 : f32
    %cst_17 = arith.constant -1.000000e+30 : f32
    %37 = vector.broadcast %cst_16 : f32 to vector<8x8xf32>
    %38 = vector.broadcast %cst_17 : f32 to vector<8x8xf32>
    %39 = arith.select %36, %37, %38 : vector<8x8xi1>, vector<8x8xf32>
    %40 = vector.shape_cast %39 : vector<8x8xf32> to vector<1x8x8xf32>
    %41 = vector.broadcast %40 : vector<1x8x8xf32> to vector<4x8x8xf32>
    %42 = arith.addf %30, %41 : vector<4x8x8xf32>
    %cst_18 = arith.constant dense<0xFF800000> : vector<4x8xf32>
    %43 = vector.multi_reduction <maximumf>, %42, %cst_18 [2] : vector<4x8x8xf32> to vector<4x8xf32>
    %44 = vector.shape_cast %43 : vector<4x8xf32> to vector<4x8x1xf32>
    %45 = vector.broadcast %44 : vector<4x8x1xf32> to vector<4x8x8xf32>
    %46 = arith.subf %42, %45 : vector<4x8x8xf32>
    %47 = math.exp %46 : vector<4x8x8xf32>
    %cst_19 = arith.constant dense<0.000000e+00> : vector<4x8xf32>
    %48 = vector.multi_reduction <add>, %47, %cst_19 [2] : vector<4x8x8xf32> to vector<4x8xf32>
    %49 = vector.shape_cast %48 : vector<4x8xf32> to vector<4x8x1xf32>
    %50 = tpu.reciprocal %49 {approx = true} : vector<4x8x1xf32> -> vector<4x8x1xf32>
    %51 = vector.broadcast %50 : vector<4x8x1xf32> to vector<4x8x8xf32>
    %52 = arith.mulf %47, %51 : vector<4x8x8xf32>
    "tpu.trace_start"() <{level = 10 : i32, message = "hqk,hkc->hqc"}> : () -> ()
    %cst_20 = arith.constant dense<0.000000e+00> : vector<4x8x8xf32>
    %53 = tpu.matmul %52, %27, %cst_20 {dimension_numbers = #tpu.dot_dimension_numbers<[2], [1], [1], [2], [0, 0, 0, 1, 1, 2], [0], [0]>} : vector<4x8x8xf32>, vector<4x8x8xf32>, vector<4x8x8xf32> -> vector<4x8x8xf32>
    "tpu.trace_stop"() : () -> ()
    %54 = vector.extract_strided_slice %53 {offsets = [0, 0, 0], sizes = [1, 8, 8], strides = [1, 1, 1]} : vector<4x8x8xf32> to vector<1x8x8xf32>
    %55 = vector.shape_cast %54 : vector<1x8x8xf32> to vector<8x8xf32>
    %56 = vector.extract_strided_slice %53 {offsets = [1, 0, 0], sizes = [1, 8, 8], strides = [1, 1, 1]} : vector<4x8x8xf32> to vector<1x8x8xf32>
    %57 = vector.shape_cast %56 : vector<1x8x8xf32> to vector<8x8xf32>
    %58 = vector.extract_strided_slice %53 {offsets = [2, 0, 0], sizes = [1, 8, 8], strides = [1, 1, 1]} : vector<4x8x8xf32> to vector<1x8x8xf32>
    %59 = vector.shape_cast %58 : vector<1x8x8xf32> to vector<8x8xf32>
    %60 = vector.extract_strided_slice %53 {offsets = [3, 0, 0], sizes = [1, 8, 8], strides = [1, 1, 1]} : vector<4x8x8xf32> to vector<1x8x8xf32>
    %61 = vector.shape_cast %60 : vector<1x8x8xf32> to vector<8x8xf32>
    %62 = tpu.concatenate %55, %57, %59, %61 in 1 : vector<8x8xf32>, vector<8x8xf32>, vector<8x8xf32>, vector<8x8xf32> -> vector<8x32xf32>
    %c0_21 = arith.constant 0 : index
    %c0_22 = arith.constant 0 : index
    %c0_23 = arith.constant 0 : index
    %63 = vector.load %arg3[%c0_21, %c0_22, %c0_23] : memref<1x8x32xf32, #tpu.memory_space<vmem>>, vector<1x8x32xf32>
    %64 = vector.shape_cast %63 : vector<1x8x32xf32> to vector<8x32xf32>
    %65 = arith.addf %64, %62 : vector<8x32xf32>
    %c0_24 = arith.constant 0 : index
    %c0_25 = arith.constant 0 : index
    %c0_26 = arith.constant 0 : index
    %66 = vector.load %arg6[%c0_24, %c0_25, %c0_26] : memref<1x8x32xf32, #tpu.memory_space<vmem>>, vector<1x8x32xf32>
    %67 = vector.shape_cast %66 : vector<1x8x32xf32> to vector<8x32xf32>
    %68 = vector.shape_cast %65 : vector<8x32xf32> to vector<1x8x32xf32>
    tpu.vector_store %arg6[%c0_24, %c0_25, %c0_26], %68 {strides = array<i32>} : memref<1x8x32xf32, #tpu.memory_space<vmem>>, vector<1x8x32xf32>,
    return
  }
  func.func @transform_0(%arg0: i32, %arg1: i32) -> (i32, i32, i32) {
    %c0_i32 = arith.constant 0 : i32
    %c0_i32_0 = arith.constant 0 : i32
    %c0_i32_1 = arith.constant 0 : i32
    return %arg0, %c0_i32, %c0_i32_0 : i32, i32, i32
  }
  func.func @transform_1(%arg0: i32, %arg1: i32) -> (i32, i32, i32) {
    %c0_i32 = arith.constant 0 : i32
    %c0_i32_0 = arith.constant 0 : i32
    return %arg0, %arg1, %c0_i32 : i32, i32, i32
  }
  func.func @transform_2(%arg0: i32, %arg1: i32) -> (i32, i32) {
    %c0_i32 = arith.constant 0 : i32
    %c0_i32_0 = arith.constant 0 : i32
    %c0_i32_1 = arith.constant 0 : i32
    return %c0_i32, %c0_i32_0 : i32, i32
  }
  func.func @transform_3(%arg0: i32, %arg1: i32) -> (i32, i32) {
    %c0_i32 = arith.constant 0 : i32
    %c0_i32_0 = arith.constant 0 : i32
    %c0_i32_1 = arith.constant 0 : i32
    return %c0_i32, %c0_i32_0 : i32, i32
  }
  func.func @transform_4(%arg0: i32, %arg1: i32) -> (i32, i32, i32) {
    %c0_i32 = arith.constant 0 : i32
    %c0_i32_0 = arith.constant 0 : i32
    return %arg0, %arg1, %c0_i32 : i32, i32, i32
  }
}

</mosaic_0001>

<bundles_post_ra>
// kernel: tpu_custom_call.1
= control target key start
LH: loop header
LB: loop body
LE: loop exit
PB: predicated region body
PF: predicated region fallthrough
CT: control target
= control target key end

     0   :  { %s1494_s0 = inlined_call_operand.hbm [shape: f32[2,8,32], index: 0, kind: input, shape index: {}]   ;;  %s1495_s1 = inlined_call_operand.hbm [shape: f32[2,8,32], index: 1, kind: input, shape index: {}]   ;;  %s1496_s2 = inlined_call_operand.hbm [shape: f32[32,32], index: 2, kind: input, shape index: {}]   ;;  %s1497_s3 = inlined_call_operand.hbm [shape: f32[32,64], index: 3, kind: input, shape index: {}]   ;;  %s1498_s4 = inlined_call_operand.hbm [shape: f32[2,8,32], index: 4, kind: output, shape index: {}]  }
   0x1   :  { %1501 = sst [smem:[#allocation21_spill]] %s1496_s2 }
   0x2   :  { %1502 = sst [smem:[#allocation22_spill]] %s1497_s3 }
   0x3   :  { %9 = vsyncpa [#allocation5], 0 }
   0x4   :  { %11 = vsyncpa [#allocation5 + $0x1], 0 }
   0x5   :  { %12 = vsyncpa [#allocation8], 0 }
   0x6   :  { %14 = vsyncpa [#allocation8 + $0x1], 0 }
   0x7   :  { %15 = vsyncpa [#allocation11], 0 }
   0x8   :  { %16 = vsyncpa [#allocation6], 0 }
   0x9   :  { %18 = vsyncpa [#allocation6 + $0x1], 0  ;;  %s1282_s15 = smov 0   ;;  %s1284_s16 = smov 0  }
   0xa   :  { %s1286_s17 = smov 0   ;;  %s1288_s18 = smov 0  }
   0xb   :  { %s1290_s19 = smov 0   ;;  %s1292_s20 = smov 0  }
   0xc LB: > { %1503 = sst [smem:[#allocation18_spill]] %s1238_s19  ;;  %s1313_s21 = sadd.s32 4294967295, %s1242_s20   ;;  %s1242_s20 = sphi %s1292_s20, %s24_s20   ;;  %s1238_s19 = sphi %s1290_s19, %s1515_s19   ;;  %s1234_s18 = sphi %s1288_s18, %s1514_s18   ;;  %s1230_s17 = sphi %s1286_s17, %s1518_s17   ;;  %s1226_s16 = sphi %s1284_s16, %s1517_s16   ;;  %s1222_s15 = sphi %s1282_s15, %s1516_s15  }
   0xd   : > { %p875_p0 = scmp.ge.s32.totalorder %s1242_s20, 1  ;;  %p57_p1 = scmp.eq.s32.totalorder %s1313_s21, 0 }
   0xe   : > { %p165_p2 = scmp.lt.s32.totalorder %s1242_s20, 3  ;;  %s1504_s2 = sld [smem:[#allocation21_spill]] }
   0xf   : > { %s1244_s26 = smov [#allocation9]   ;;  %p878_p6 = scmp.ge.s32.totalorder %s1242_s20, 2 }
  0x10   : > { %p1321_p3 = pnand %p875_p0, %p165_p2  ;;  %s178_s27 = sshll.u32 %s1244_s26, 4  ;;  %s179_s27 = int_to_ptr.vmem [resolvable:$true] %s178_s27 }
  0x11   : > { %s1506_s3 = sld [smem:[#allocation22_spill]]  ;;  %s1245_s5 = smov 128  }
  0x12   : > { %p921_p4 = pneg %p1321_p3  ;;  %s1246_s6 = smov 8  }
  0x13   : > { %s1247_s7 = smov [#allocation10]   ;;  %s874_s9 = sadd.s32 4294967294, %s1242_s20  }
  0x14   : > { %s176_s24 = sshll.u32 %s1504_s2, 4  ;;  %p922_p5 = pnand %p921_p4, %p57_p1  ;;  %s177_s24 = int_to_ptr.hbm [resolvable:$true] %s176_s24 }
  0x15   : > { %s192_s8 = sshll.u32 %s1247_s7, 4  ;;  %s36_s10 = sadd.s32 1, %s1238_s19  ;;  %s193_s8 = int_to_ptr.vmem [resolvable:$true] %s192_s8 }
  0x16   : > { %924 = dma.hbm_to_vmem [thread:$0]  (!%p922_p5), %s177_s24, 512, %s179_s27, [#allocation8], %s1245_s5, %s1245_s5, %s1246_s6  }
  0x17   : > { %s190_s30 = sshll.u32 %s1506_s3, 4  ;;  %p38_p7 = scmp.ge.s32.totalorder %s36_s10, 2  ;;  %s191_s30 = int_to_ptr.hbm [resolvable:$true] %s190_s30 }
  0x18   : > { %927 = dma.hbm_to_vmem [thread:$0]  (!%p922_p5), %s191_s30, 512, %s193_s8, [#allocation11], %s1245_s5, %s1245_s5, %s1246_s6  }
  0x19   : > { %s43_s11 = sadd.s32 1, %s1230_s17  ;;  %p50_p8 = scmp.ne.s32.totalorder %s1230_s17, %s1226_s16 }
  0x1a   : > { %p51_p9 = scmp.eq.s32.totalorder %s1242_s20, 0  ;;  %s1520_s10 = smov (%p38_p7, %s36_s10), 0 }
  0x1b   : > { %1507 = sst [smem:[#allocation19_spill]] %s1520_s10  ;;  %p56_p11 = scmp.ne.s32.totalorder %s1226_s16, %s1222_s15 }
  0x1c   : > { %p1341_p10 = por %p51_p9, %p50_p8  ;;  %s40_s13 = ssub.s32 %s1238_s19, %s1520_s10 }
  0x1d   : > { %p152_p12 = scmp.eq.s32.totalorder %s1313_s21, 1  ;;  %p41_p13 = scmp.eq.s32.totalorder %s40_s13, 0 }
  0x1e   : > { %p1352_p0 = por %p57_p1, %p56_p11  ;;  %p158_p4 = scmp.eq.s32.totalorder %s874_s9, 1 }
  0x1f   : > { %p1356_p2 = por %p152_p12, %p50_p8  ;;  %p941_p7 = scmp.lt.s32.totalorder %s1242_s20, 2 }
  0x20   : > { %s1361_s23 = scalar_select %p41_p13, %s1230_s17, %s43_s11  }
  0x21   : > { %p1363_p5 = por %p158_p4, %p56_p11  ;;  %s206_s26 = sand.u32 1, %s1230_s17  }
  0x22   : > { %1511 = sst [smem:[#allocation20_spill]] %s1361_s23  ;;  %s880_s27 = sshll.u32 %s1238_s19, 3 }
  0x23   : > { %s879_s28 = sshll.u32 %s206_s26, 3  ;;  %s214_s5 = scalar_lea.hbm %s1494_s0, %s880_s27 }
  0x24   : > { %s216_s6 = sshll.u32 %s214_s5, 4  ;;  %s210_s7 = scalar_lea.vmem [#allocation4], %s879_s28  ;;  %s217_s6 = int_to_ptr.hbm [resolvable:$true] %s216_s6 }
  0x25   : > { %s218_s8 = sshll.u32 %s210_s7, 4  ;;  %p929_p8 = pnand %p941_p7, %p1341_p10  ;;  %s219_s8 = int_to_ptr.vmem [resolvable:$true] %s218_s8 }
  0x26   : > { %s234_s13 = scalar_lea.hbm %s1495_s1, %s880_s27  ;;  %s225_s2 = sand.u32 1, %s1242_s20  }
  0x27   : > { %s207_s3 = scalar_lea.sflag [#allocation5], %s206_s26  ;;  %s236_s10 = sshll.u32 %s234_s13, 4  ;;  %s237_s10 = int_to_ptr.hbm [resolvable:$true] %s236_s10 }
  0x28   : > { %931 = dma.hbm_to_vmem [thread:$0]  (!%p929_p8), %s217_s6, 128, %s219_s8, %s207_s3  }
  0x29   : > { %s229_s19 = scalar_lea.vmem [#allocation7], %s879_s28  ;;  %s226_s29 = scalar_lea.sflag [#allocation8], %s225_s2 }
  0x2a   : > { %s238_s23 = sshll.u32 %s229_s19, 4  ;;  %247 = sbr.rel (%p1321_p3) target bundleno = 1128 (0x468), region = 36  ;;  %s239_s23 = int_to_ptr.vmem [resolvable:$true] %s238_s23 }
  0x2b   : > { %934 = dma.hbm_to_vmem [thread:$0]  (!%p929_p8), %s237_s10, 128, %s239_s23, %s226_s29  }
  0x2c   : > { %s1382_s12 = sand.u32 (!%p1321_p3), 1, %s1226_s16  }
  0x2d   : > { %s1385_s27 = sshll.u32 (!%p1321_p3), %s1382_s12, 3  ;;  %s250_s3 = scalar_lea.sflag (!%p1321_p3), [#allocation5], %s1382_s12 }
  0x2e   : > { %s253_s26 = scalar_lea.vmem (!%p1321_p3), [#allocation4], %s1385_s27 }
  0x2f   : > { %1201 = dma.done.wait (%p1352_p0), %s250_s3, 128  }
  0x30   : > { %1203 = vsyncadd (%p1352_p0), %s250_s3, 4294967168  ;;  %s259_s2 = sand.u32 1, %s1313_s21   ;;  %s263_s25 = scalar_lea.vmem [#allocation7], %s1385_s27 }
  0x31   : > { %s260_s19 = scalar_lea.sflag [#allocation8], %s259_s2 }
  0x32   : > { %1205 = dma.done.wait (%p1352_p0), %s260_s19, 128  }
  0x33   : > { %1207 = vsyncadd (%p1352_p0), %s260_s19, 4294967168 }
  0x34   : > { %1209 = dma.done.wait (%p57_p1), [#allocation8], 512  }
  0x35   : > { %1211 = vsyncadd (%p57_p1), [#allocation8], 4294966784 }
  0x36   : > { %1213 = dma.done.wait (%p57_p1), [#allocation11], 512  }
  0x37   : > { %1215 = vsyncadd (%p57_p1), [#allocation11], 4294966784  ;;  %v308_v0 = vld [vmem:[%s253_s26] sm:$0xff]  ;;  %vm310_vm0 = vcmask 261120   ;;  %v1407_v2 = vld [vmem:[%s263_s25] sm:$0xff]  ;;  %v1248_v6 = vmov 32.0   ;;  %v566_v55 = vlaneseq }
  0x38   : > { %v309_v1 = vmul.f32 %v308_v0, %v308_v0  ;;  %v393_v4 = vmul.f32 %v1407_v2, %v1407_v2  ;;  %1006 = vrcp.f32 %v1248_v6  ;;  %v337_v9 = vld [vmem:[#allocation10 + $0x18] sm:$0xff]  ;;  %v336_v11 = vld [vmem:[#allocation10 + $0x10] sm:$0xff]  ;;  %v335_v12 = vld [vmem:[#allocation10 + $0x8] sm:$0xff]  ;;  %vm371_vm8 = vcmask 64512   ;;  %s1249_s21 = smov 104   ;;  %s1250_s10 = smov 120  }
  0x39   : > { %353 = vmatpush.msra.mxu0 %v337_v9  ;;  %v334_v14 = vld [vmem:[#allocation10] sm:$0xff]  ;;  %v421_v15 = vld [vmem:[#allocation9 + $0x18] sm:$0xff]  ;;  %v420_v17 = vld [vmem:[#allocation9 + $0x10] sm:$0xff]  ;;  %s1251_s14 = smov 112   ;;  %v567_v56 = vshrl.u32 %v566_v55, 7  ;;  %v571_v57 = vand.u32 127, %v566_v55 }
  0x3a   : > { %v311_v3 = vsel %vm310_vm0, %v309_v1, 0.0  ;;  %v395_v5 = vsel %vm310_vm0, %v393_v4, 0.0  ;;  %437 = vmatpush.msra.mxu1 %v421_v15  ;;  %v419_v18 = vld [vmem:[#allocation9 + $0x8] sm:$0xff]  ;;  %v418_v19 = vld [vmem:[#allocation9] sm:$0xff]  ;;  %v1252_v61 = vmov -1e+30  }
  0x3b   : > { %312 = vadd.xlane.f32.xlu0 %v311_v3  ;;  %354 = vmatpush.msra.mxu0 %v336_v11  ;;  %vm572_vm9 = vcmp.le.s32.totalorder %v571_v57, %v567_v56  ;;  %s1253_s23 = smov 96   ;;  %s1254_s28 = smov 16   ;;  %vm727_vm10 = vcmask 130048   ;;  %vm729_vm11 = vcmask 195584  }
  0x3c   : > { %438 = vmatpush.msra.mxu1 %v420_v17  ;;  %v573_v62 = vsel %vm572_vm9, 0.0, %v1252_v61  ;;  %s1255_s30 = smov 8   ;;  %s1256_s5 = smov 24  }
  0x3d   : > { %355 = vmatpush.msra.mxu0 %v335_v12  ;;  %s904_s6 = sshll.u32 %s1234_s18, 3  ;;  %s303_s11 = scalar_lea.vmem [#allocation12], %s1385_s27 }
  0x3e   : > { %v1007_v7 = vpop.eup %1006  ;;  %439 = vmatpush.msra.mxu1 %v419_v18  ;;  %s746_s9 = scalar_lea.hbm %s1498_s4, %s904_s6  ;;  %s748_s13 = sshll.u32 %s303_s11, 4  ;;  %s749_s13 = int_to_ptr.vmem [resolvable:$true] %s748_s13 }
  0x3f   : > { %v315_v8 = vmul.f32 32.0, %v1007_v7  ;;  %356 = vmatpush.msra.mxu0 %v334_v14  ;;  %vm319_vm1 = vweird.f32 %v1007_v7  ;;  %s750_s29 = sshll.u32 %s746_s9, 4  ;;  %s735_s18 = scalar_lea.sflag [#allocation6], %s1382_s12  ;;  %s751_s29 = int_to_ptr.hbm [resolvable:$true] %s750_s29 }
  0x40   : > { %440 = vmatpush.msra.mxu1 %v418_v19  ;;  %s1162_s3 = sshra.s32 %s751_s29, 4  ;;  %s1168_s19 = scalar_lea.hbm %s1498_s4, 16  ;;  %s1163_s3 = int_to_ptr.hbm [resolvable:$true] %s1162_s3 }
  0x41   : > { %v316_v10 = vsub.f32 1.0, %v315_v8  ;;  %s1164_s26 = scalar_lea.hbm %s1163_s3, 8  ;;  %p1169_p10 = scmp.lt.s32.totalorder %s1163_s3, %s1498_s4 }
  0x42   : > { %p1165_p1 = scmp.ne.s32.totalorder %s1163_s3, %s1164_s26  ;;  %p1170_p11 = scmp.lt.s32.totalorder %s1168_s19, %s1164_s26 }
  0x43   : > { %396 = vadd.xlane.f32.xlu0 %v395_v5  ;;  %v317_v13 = vmul.f32 %v1007_v7, %v316_v10 }
  0x44   : > { %p1166_p3 = pnand %p1165_p1, %p1356_p2  ;;  %p1171_p12 = por %p1170_p11, %p1169_p10 }
  0x45   : > { %v318_v16 = vadd.f32 %v1007_v7, %v317_v13 }
  0x46   : > { %p1167_p9 = pneg %p1166_p3 }
  0x47   : > { %v320_v20 = vsel %vm319_vm1, %v1007_v7, %v318_v16 }
  0x48   : > { %p1172_p13 = pnand %p1171_p12, %p1167_p9 }
  0xae   : > { %v313_v21 = vpop.xlane.xlu0 %312 }
  0xaf   : > { %v321_v22 = vmul.f32 %v320_v20, %v313_v21 }
  0xb1   : > { %v322_v23 = vadd.f32 1e-06, %v321_v22 }
  0xb3   : > { %1008 = vrsqrt.f32 %v322_v23  ;;  %vm329_vm3 = vweird.f32 %v322_v23 }
  0xb6   : > { %v397_v24 = vpop.xlane.xlu0 %396 }
  0xb7   : > { %v405_v25 = vmul.f32 %v397_v24, %v320_v20 }
  0xb9   : > { %v1009_v26 = vpop.eup %1008  ;;  %v406_v27 = vadd.f32 1e-06, %v405_v25 }
  0xba   : > { %v324_v28 = vmul.f32 %v1009_v26, %v322_v23  ;;  %vm330_vm2 = vweird.f32 %v1009_v26 }
  0xbb   : > { %1010 = vrsqrt.f32 %v406_v27  ;;  %vm331_vm4 = vmor %vm329_vm3, %vm330_vm2  ;;  %vm413_vm5 = vweird.f32 %v406_v27 }
  0xbc   : > { %v325_v29 = vmul.f32 %v1009_v26, %v324_v28 }
  0xbe   : > { %v326_v30 = vmul.f32 0.5, %v325_v29 }
  0xc0   : > { %v327_v31 = vsub.f32 1.5, %v326_v30 }
  0xc1   : > { %v1011_v32 = vpop.eup %1010 }
  0xc2   : > { %v408_v33 = vmul.f32 %v1011_v32, %v406_v27  ;;  %v328_v34 = vmul.f32 %v1009_v26, %v327_v31  ;;  %vm414_vm6 = vweird.f32 %v1011_v32 }
  0xc3   : > { %vm415_vm7 = vmor %vm413_vm5, %vm414_vm6 }
  0xc4   : > { %v409_v35 = vmul.f32 %v1011_v32, %v408_v33  ;;  %v332_v36 = vsel %vm331_vm4, %v1009_v26, %v328_v34 }
  0xc5   : > { %v333_v37 = vmul.f32 %v332_v36, %v308_v0 }
  0xc6   : > { %v410_v38 = vmul.f32 0.5, %v409_v35 }
  0xc7   : > { %889 = vmatmul.msk.f32.vlgmr.msra.gmra.mxu0 %vm310_vm0, %v333_v37 }
  0xc8   : > { %v411_v39 = vsub.f32 1.5, %v410_v38 }
  0xca   : > { %v412_v40 = vmul.f32 %v1011_v32, %v411_v39 }
  0xcc   : > { %v416_v41 = vsel %vm415_vm7, %v1011_v32, %v412_v40 }
  0xcd   : > { %v417_v42 = vmul.f32 %v416_v41, %v1407_v2 }
  0xcf   : > { %890 = vmatmul.msk.f32.vlgmr.msra.gmra.mxu1 %vm310_vm0, %v417_v42 }
 0x144   : > { %v358_v43 = vpop.f32.mrf.mxu0 }
 0x145   : > { %372 = vst.msk [vmem:[#allocation2] sm:$0xff] %vm371_vm8, %v358_v43  ;;  %368 = vrot.lane.b32.xlu2 %v358_v43, %s1249_s21  ;;  %362 = vrot.lane.b32.xlu1 %v358_v43, %s1250_s10 }
 0x14c   : > { %v442_v44 = vpop.f32.mrf.mxu1  ;;  %v452_v45 = vld [vmem:[#allocation2] sm:$0xff] }
 0x14d   : > { %365 = vrot.lane.b32.xlu1 %v358_v43, %s1251_s14  ;;  %891 = vmatpush.xpose.msk.msra.mxu2 %vm371_vm8, %v452_v45 }
 0x14e   : > { %448 = vrot.lane.b32.xlu0 %v442_v44, %s1251_s14  ;;  %446 = vrot.lane.b32.xlu2 %v442_v44, %s1250_s10 }
 0x150   : > { %892 = vmatmul.msk.f32.vlgmr.msra.gmra.mxu2 %vm371_vm8, %v442_v44 }
 0x155   : > { %450 = vrot.lane.b32.xlu1 %v442_v44, %s1249_s21 }
 0x19f   : > { %v369_v46 = vpop.permute.xlu2 %368 }
 0x1a0   : > { %375 = vst.msk [vmem:[#allocation2 + $0x18] sm:$0xff] %vm371_vm8, %v369_v46 }
 0x1a7   : > { %v455_v50 = vld [vmem:[#allocation2 + $0x18] sm:$0xff] }
 0x1a8   : > { %v447_v51 = vpop.permute.xlu2 %446 }
 0x1b7   : > { %v1420_v47 = vpop.permute.xlu1 %362 }
 0x1b8   : > { %373 = vst.msk [vmem:[#allocation2 + $0x8] sm:$0xff] %vm371_vm8, %v1420_v47 }
 0x1bf   : > { %v366_v48 = vpop.permute.xlu1 %365  ;;  %v453_v49 = vld [vmem:[#allocation2 + $0x8] sm:$0xff] }
 0x1c0   : > { %374 = vst.msk [vmem:[#allocation2 + $0x10] sm:$0xff] %vm371_vm8, %v366_v48  ;;  %893 = vmatpush.xpose.msk.msra.mxu3 %vm371_vm8, %v453_v49  ;;  %v449_v53 = vpop.permute.xlu0 %448 }
 0x1c3   : > { %894 = vmatmul.msk.f32.vlgmr.msra.gmra.mxu3 %vm371_vm8, %v447_v51 }
 0x1c4   : > { %897 = vmatpush.xpose.msk.msrb.mxu3 %vm371_vm8, %v455_v50 }
 0x1c7   : > { %v454_v52 = vld [vmem:[#allocation2 + $0x10] sm:$0xff]  ;;  %v451_v54 = vpop.permute.xlu1 %450 }
 0x1c8   : > { %895 = vmatpush.xpose.msk.msrb.mxu2 %vm371_vm8, %v454_v52 }
 0x1cb   : > { %896 = vmatmul.msk.f32.vlgmr.msrb.gmra.mxu2 %vm371_vm8, %v449_v53  ;;  %898 = vmatmul.msk.f32.vlgmr.msrb.gmra.mxu3 %vm371_vm8, %v451_v54 }
 0x1d3   : > { %v483_v58 = vpop.f32.mrf.mxu2 }
 0x1d4   : > { %v561_v8 = vmul.f32 0.35355338, %v483_v58 }
 0x1d6   : > { %v574_v11 = vadd.f32 %v573_v62, %v561_v8 }
 0x1d8   : > { %v578_v12 = vsel %vm371_vm8, %v574_v11, -inf }
 0x246   : > { %v508_v59 = vpop.f32.mrf.mxu3 }
 0x247   : > { %v562_v60 = vmul.f32 0.35355338, %v508_v59 }
 0x249   : > { %v575_v63 = vadd.f32 %v573_v62, %v562_v60 }
 0x24b   : > { %v581_v0 = vsel %vm371_vm8, %v575_v63, -inf }
 0x24c   : > { %582 = vmax.xlane.f32.xlu0 %v581_v0 }
 0x24e   : > { %v533_v1 = vpop.f32.mrf.mxu2  ;;  %v558_v3 = vpop.f32.mrf.mxu3 }
 0x24f   : > { %v563_v4 = vmul.f32 0.35355338, %v533_v1  ;;  %v564_v5 = vmul.f32 0.35355338, %v558_v3 }
 0x251   : > { %v577_v6 = vadd.f32 %v573_v62, %v564_v5  ;;  %v576_v7 = vadd.f32 %v573_v62, %v563_v4 }
 0x253   : > { %v587_v9 = vsel %vm371_vm8, %v577_v6, -inf  ;;  %v584_v10 = vsel %vm371_vm8, %v576_v7, -inf }
 0x254   : > { %588 = vmax.xlane.f32.xlu1 %v587_v9  ;;  %585 = vmax.xlane.f32.xlu2 %v584_v10 }
 0x25c   : > { %579 = vmax.xlane.f32.xlu2 %v578_v12 }
 0x260   : > { %382 = vrot.lane.b32.xlu0 %v369_v46, %s1253_s23 }
 0x268   : > { %376 = vrot.lane.b32.xlu0 %v358_v43, %s1253_s23 }
 0x26d   : > { %380 = vrot.lane.b32.xlu1 %v366_v48, %s1253_s23 }
 0x2bf   : > { %v583_v14 = vpop.xlane.xlu0 %582 }
 0x2c0   : > { %v591_v17 = vsub.f32 %v575_v63, %v583_v14 }
 0x2c2   : > { %v596_v18 = vmul.f32 1.442695, %v591_v17 }
 0x2c7   : > { %v586_v13 = vpop.xlane.xlu2 %585  ;;  %v589_v20 = vpop.xlane.xlu1 %588 }
 0x2c8   : > { %v592_v15 = vsub.f32 %v576_v7, %v586_v13  ;;  %v593_v25 = vsub.f32 %v577_v6, %v589_v20 }
 0x2ca   : > { %v598_v16 = vmul.f32 1.442695, %v592_v15  ;;  %v600_v27 = vmul.f32 1.442695, %v593_v25 }
 0x2cc   : > { %1012 = vpow2.f32 %v598_v16 }
 0x2cd   : > { %1014 = vpow2.f32 %v596_v18 }
 0x2cf   : > { %v580_v19 = vpop.xlane.xlu2 %579 }
 0x2d0   : > { %v590_v21 = vsub.f32 %v574_v11, %v580_v19 }
 0x2d2   : > { %v594_v22 = vmul.f32 1.442695, %v590_v21  ;;  %v383_v23 = vpop.permute.xlu0 %382  ;;  %v1013_v24 = vpop.eup %1012 }
 0x2d3   : > { %391 = vst.msk [vmem:[#allocation3 + $0x18] sm:$0xff] %vm371_vm8, %v383_v23  ;;  %v608_v26 = vsel %vm371_vm8, %v1013_v24, 0.0  ;;  %v1015_v28 = vpop.eup %1014 }
 0x2d4   : > { %1016 = vpow2.f32 %v594_v22  ;;  %609 = vadd.xlane.f32.xlu2 %v608_v26  ;;  %v605_v33 = vsel %vm371_vm8, %v1015_v28, 0.0 }
 0x2d5   : > { %1018 = vpow2.f32 %v600_v27 }
 0x2da   : > { %v1017_v29 = vpop.eup %1016  ;;  %v377_v30 = vpop.permute.xlu0 %376  ;;  %v459_v31 = vld [vmem:[#allocation3 + $0x18] sm:$0xff] }
 0x2db   : > { %388 = vst.msk [vmem:[#allocation3] sm:$0xff] %vm371_vm8, %v377_v30  ;;  %709 = vmatpush.msra.mxu3 %v459_v31  ;;  %v602_v32 = vsel %vm371_vm8, %v1017_v29, 0.0  ;;  %v1019_v35 = vpop.eup %1018 }
 0x2dc   : > { %603 = vadd.xlane.f32.xlu1 %v602_v32  ;;  %606 = vadd.xlane.f32.xlu2 %v605_v33  ;;  %v611_v37 = vsel %vm371_vm8, %v1019_v35, 0.0 }
 0x2df   : > { %v381_v34 = vpop.permute.xlu1 %380 }
 0x2e0   : > { %390 = vst.msk [vmem:[#allocation3 + $0x10] sm:$0xff] %vm371_vm8, %v381_v34 }
 0x2e2   : > { %v456_v36 = vld [vmem:[#allocation3] sm:$0xff] }
 0x2e3   : > { %640 = vmatpush.msrb.mxu0 %v456_v36 }
 0x2e4   : > { %612 = vadd.xlane.f32.xlu2 %v611_v37 }
 0x2e7   : > { %v458_v38 = vld [vmem:[#allocation3 + $0x10] sm:$0xff] }
 0x2e8   : > { %686 = vmatpush.msra.mxu2 %v458_v38 }
 0x2fc   : > { %378 = vrot.lane.b32.xlu2 %v1420_v47, %s1253_s23 }
 0x347   : > { %v610_v39 = vpop.xlane.xlu2 %609 }
 0x348   : > { %1020 = vrcp.f32 %v610_v39 }
 0x34e   : > { %v1021_v40 = vpop.eup %1020 }
 0x34f   : > { %v604_v41 = vpop.xlane.xlu1 %603  ;;  %v620_v42 = vmul.f32 %v1021_v40, %v1013_v24  ;;  %v607_v43 = vpop.xlane.xlu2 %606 }
 0x350   : > { %1022 = vrcp.f32 %v604_v41 }
 0x351   : > { %901 = vmatmul.msk.f32.vlgmr.msra.gmra.mxu2 %vm371_vm8, %v620_v42 }
 0x356   : > { %v1023_v44 = vpop.eup %1022 }
 0x357   : > { %v618_v45 = vmul.f32 %v1023_v44, %v1017_v29  ;;  %v613_v46 = vpop.xlane.xlu2 %612 }
 0x358   : > { %1024 = vrcp.f32 %v613_v46 }
 0x359   : > { %899 = vmatmul.msk.f32.vlgmr.msrb.gmra.mxu0 %vm371_vm8, %v618_v45  ;;  %1026 = vrcp.f32 %v607_v43 }
 0x35e   : > { %v1025_v48 = vpop.eup %1024 }
 0x35f   : > { %v621_v49 = vmul.f32 %v1025_v48, %v1019_v35  ;;  %v379_v50 = vpop.permute.xlu2 %378  ;;  %v1027_v47 = vpop.eup %1026 }
 0x360   : > { %389 = vst.msk [vmem:[#allocation3 + $0x8] sm:$0xff] %vm371_vm8, %v379_v50  ;;  %v619_v52 = vmul.f32 %v1027_v47, %v1015_v28 }
 0x361   : > { %902 = vmatmul.msk.f32.vlgmr.msra.gmra.mxu3 %vm371_vm8, %v621_v49 }
 0x367   : > { %v457_v51 = vld [vmem:[#allocation3 + $0x8] sm:$0xff] }
 0x368   : > { %663 = vmatpush.msrb.mxu1 %v457_v51 }
 0x369   : > { %900 = vmatmul.msk.f32.vlgmr.msrb.gmra.mxu1 %vm371_vm8, %v619_v52 }
 0x3d4   : > { %v688_v53 = vpop.f32.mrf.mxu2 }
 0x3d5   : > { %719 = vrot.lane.b32.xlu2 %v688_v53, %s1254_s28 }
 0x3d6   : > { %v642_v57 = vpop.f32.mrf.mxu0 }
 0x3e4   : > { %v711_v55 = vpop.f32.mrf.mxu3 }
 0x3e6   : > { %v665_v54 = vpop.f32.mrf.mxu1 }
 0x3e7   : > { %715 = vrot.lane.b32.xlu0 %v665_v54, %s1255_s30 }
 0x3ef   : > { %723 = vrot.lane.b32.xlu0 %v711_v55, %s1256_s5 }
 0x42f   : > { %v720_v59 = vpop.permute.xlu2 %719 }
 0x459   : > { %v716_v56 = vpop.permute.xlu0 %715 }
 0x45a   : > { %v726_v58 = vsel %vm371_vm8, %v642_v57, %v716_v56 }
 0x45b   : > { %v728_v61 = vsel %vm727_vm10, %v726_v58, %v720_v59 }
 0x461   : > { %v724_v60 = vpop.permute.xlu0 %723 }
 0x462   : > { %v730_v62 = vsel %vm729_vm11, %v728_v61, %v724_v60 }
 0x463   : > { %v732_v63 = vadd.f32 %v730_v62, %v1407_v2 }
 0x465   : > { %733 = vst.msk [vmem:[%s303_s11] sm:$0xff] %vm310_vm0, %v732_v63 }
 0x466   : > { %1175 = shalt.err (!%p1172_p13)
}
 0x467   : > { %919 = dma.vmem_to_hbm [thread:$0]  (%p1356_p2), %s749_s13, 128, %s751_s29, %s735_s18  }
 0x468 PF: > { %s762_s12 = sand.u32 1, %s1222_s15   ;;  %p936_p0 = pnand %p878_p6, %p1363_p5 }
 0x469   : > { %s763_s10 = scalar_lea.sflag [#allocation6], %s762_s12 }
 0x46a   : > { %p937_p4 = pneg %p936_p0 }
 0x46c   : > { %1217 = dma.done.wait (%p937_p4), %s763_s10, 128  }
 0x46d   : > { %1219 = vsyncadd (%p937_p4), %s763_s10, 4294967168  ;;  %s24_s20 = sadd.s32 1, %s1242_s20   ;;  %s1513_s14 = sld [smem:[#allocation20_spill]] }
 0x46e   : > { %p21_p7 = scmp.ge.s32.totalorder %s24_s20, 4   ;;  %s1514_s18 = sld [smem:[#allocation18_spill]] }
 0x46f   : > { %s1515_s19 = sld [smem:[#allocation19_spill]]  ;;  %s1516_s15 = smov %s1226_s16 }
 0x470   : > { %s1517_s16 = smov %s1230_s17  ;;  %23 = sbr.rel (!%p21_p7) target bundleno = 12 (0xc), region = 106 }
 0x473   : > { %s1518_s17 = smov %s1513_s14 }
 0x475   :  { %769 = vsyncpa [#allocation5], 1 }
 0x476   :  { %771 = vsyncpa [#allocation5 + $0x1], 1 }
 0x477   :  { %772 = vsyncpa [#allocation8], 1 }
 0x478   :  { %774 = vsyncpa [#allocation8 + $0x1], 1 }
 0x479   :  { %775 = vsyncpa [#allocation11], 1 }
 0x47a   :  { %776 = vsyncpa [#allocation6], 1 }
 0x47b   :  { %778 = vsyncpa [#allocation6 + $0x1], 1 }

</bundles_post_ra>
